<compile_context>
chip_gen: v7x
topology: tpu7x:2x2x1
jax: 0.10.0
libtpu: 0.0.40
codegen_flags: <defaults>
</compile_context>

<pallas_src>
import functools

import jax
import jax.numpy as jnp
from jax import lax
from jax.experimental import pallas as pl
from jax.experimental.pallas import tpu as pltpu

_GRAY = (65.738 / 256.0, 129.057 / 256.0, 25.064 / 256.0)
_EPS = 1e-6
_HALO = 8  # halo rows fetched above / below each row tile (multiple of 8)


def _round_up(x, m):
    return ((x + m - 1) // m) * m


def _vmem_limit_bytes():
    """Generation-aware scoped-VMEM limit (conservative fallback if unknown)."""
    cap = None
    try:
        info = pltpu.get_tpu_info()
        for name in ("vmem_capacity_bytes", "vmem_bytes", "vmem_size_bytes"):
            cap = getattr(info, name, None)
            if cap:
                break
    except Exception:
        cap = None
    if not cap:
        cap = 64 * 1024 * 1024  # assume the smallest (v7x-like) VMEM
    # ~3/4 of physical, clamped to [32 MiB, 96 MiB]:
    #   v5e/v6e (128 MiB) -> 96 MiB ; v7x (64 MiB) -> 48 MiB.
    return max(32 * 1024 * 1024, min(96 * 1024 * 1024, (cap * 3) // 4))


def _gray_f32(ref, c):
    # Cast to f32 BEFORE the weighted sum so bf16 inputs match the f32 reference.
    if c == 3:
        return (ref[0, 0].astype(jnp.float32) * _GRAY[0]
                + ref[0, 1].astype(jnp.float32) * _GRAY[1]
                + ref[0, 2].astype(jnp.float32) * _GRAY[2])
    return ref[0, 0].astype(jnp.float32)


def _grad_kernel(above_ref, main_ref, below_ref, o_ref, win_ref, *, c, h, w, th, ws):
    # above_ref: (1, C, 8,  W)  image rows [t*TH-8, t*TH)        (clamped at t == 0)
    # main_ref : (1, C, TH, W)  image rows [t*TH,   t*TH+TH)     (last tile partial)
    # below_ref: (1, C, 8,  W)  image rows [t*TH+TH, t*TH+TH+8)  (clamped at bottom)
    # o_ref    : (1, 1, TH, W)  output rows [t*TH, t*TH+TH)
    # win_ref  : (TH+16, WS) f32 scratch; zero guard rows/cols = conv zero padding.
    t = pl.program_id(1)
    row0 = t * th

    # Zero the whole window every step: the guard columns [W, WS) and every row
    # whose image row is outside [0, H) stay exactly zero, so the roll-based
    # stencil below needs no edge masks and is independent of the rotate
    # direction convention (the two differences are squared).
    win_ref[...] = jnp.zeros(win_ref.shape, jnp.float32)

    i8 = lax.broadcasted_iota(jnp.int32, (_HALO, w), 0)
    it = lax.broadcasted_iota(jnp.int32, (th, w), 0)

    rows_above = row0 - _HALO + i8
    g_above = jnp.where((rows_above >= 0) & (rows_above < h),
                        _gray_f32(above_ref, c), 0.0)
    g_main = jnp.where(row0 + it < h, _gray_f32(main_ref, c), 0.0)
    g_below = jnp.where(row0 + th + i8 < h, _gray_f32(below_ref, c), 0.0)

    # All stores start at 8-aligned rows / lane 0 (masked partial-lane stores).
    win_ref[0:_HALO, 0:w] = g_above
    win_ref[_HALO:_HALO + th, 0:w] = g_main
    win_ref[_HALO + th:_HALO + th + _HALO, 0:w] = g_below

    win = win_ref[...]                      # (TH+16, WS) zero-padded gray, f32
    nrows = th + 2 * _HALO

    # Vertical gradient: symmetric +/-1 sublane rotation (XLU) + aligned center
    # slice.  Wrapped rows never land inside the kept slice.
    vdiff = pltpu.roll(win, nrows - 1, axis=0) - pltpu.roll(win, 1, axis=0)
    x_v = vdiff[_HALO:_HALO + th, 0:w]

    # Horizontal gradient: symmetric +/-1 lane rotation on the center rows.
    # The >=1 zero guard column (WS >= W+1) supplies the conv zero padding; any
    # wrap-around lands on zeros or on discarded columns >= W.
    center = win[_HALO:_HALO + th, :]
    hdiff = pltpu.roll(center, ws - 1, axis=1) - pltpu.roll(center, 1, axis=1)
    x_h = hdiff[:, 0:w]

    o_ref[0, 0] = jnp.sqrt(x_v * x_v + x_h * x_h + _EPS).astype(o_ref.dtype)


def grad_layer(x, *, row_tile=None):
    """Pallas TPU equivalent of GradLayer.forward. x: (N, C, H, W), C in {1, 3}."""
    n, c, h, w = x.shape
    if c not in (1, 3):
        raise ValueError("GradLayer expects 1 or 3 channels (conv in_channels=1).")
    if h < 8:
        # TODO(synk): images shorter than 8 rows would need full-dim row blocks.
        raise ValueError("grad_layer Pallas kernel requires H >= 8.")

    ws = _round_up(w + 1, 128)      # lane width of the f32 gray window (>=1 zero guard col)
    wb = _round_up(w, 128)          # lane-padded width of the DMA'd blocks (for sizing)
    itemsize = x.dtype.itemsize

    vmem_limit = _vmem_limit_bytes()
    budget = int(vmem_limit * 0.7)
    h_floor8 = max(8, (h // 8) * 8)

    if row_tile is None:
        best = 8
        th = 8
        while th <= h_floor8:
            need = (2 * c * (th + 2 * _HALO) * wb * itemsize   # input blocks, double-buffered
                    + 2 * th * wb * itemsize                    # output blocks, double-buffered
                    + (th + 2 * _HALO) * ws * 4                 # scratch window
                    + 6 * th * ws * 4)                          # f32 temporaries headroom
            if need > budget:
                break
            best = th
            th *= 2
        row_tile = best
    row_tile = max(8, (min(row_tile, h_floor8) // 8) * 8)

    # v7x has 2 TensorCores: make sure the "parallel" grid has >= 2 steps.
    if n * pl.cdiv(h, row_tile) < 2 and h >= 16:
        row_tile = _round_up(pl.cdiv(h, 2), 8)

    num_tiles = pl.cdiv(h, row_tile)
    tb = row_tile // _HALO                  # row tile size in 8-row halo-block units
    max_halo_blk = (h - 1) // _HALO         # last 8-row block whose start is in-bounds

    kernel = functools.partial(_grad_kernel, c=c, h=h, w=w, th=row_tile, ws=ws)

    in_specs = [
        # 8-row halo just above the tile (clamped to block 0 on the first tile).
        pl.BlockSpec((1, c, _HALO, w),
                     lambda b, t: (b, 0, jnp.maximum(t * tb - 1, 0), 0)),
        # Main row tile.
        pl.BlockSpec((1, c, row_tile, w), lambda b, t: (b, 0, t, 0)),
        # 8-row halo just below the tile (clamped to the last in-bounds block).
        pl.BlockSpec((1, c, _HALO, w),
                     lambda b, t: (b, 0, jnp.minimum((t + 1) * tb, max_halo_blk), 0)),
    ]
    out_specs = pl.BlockSpec((1, 1, row_tile, w), lambda b, t: (b, 0, t, 0))

    cost = pl.CostEstimate(
        flops=(11 if c == 3 else 6) * n * h * w,
        transcendentals=n * h * w,
        bytes_accessed=n * (c * (h + 2 * _HALO * num_tiles) * w + h * w) * itemsize,
    )

    return pl.pallas_call(
        kernel,
        out_shape=jax.ShapeDtypeStruct((n, 1, h, w), x.dtype),
        grid_spec=pltpu.PrefetchScalarGridSpec(
            num_scalar_prefetch=0,
            grid=(n, num_tiles),
            in_specs=in_specs,
            out_specs=out_specs,
            scratch_shapes=[pltpu.VMEM((row_tile + 2 * _HALO, ws), jnp.float32)],
        ),
        compiler_params=pltpu.CompilerParams(
            dimension_semantics=("parallel", "parallel"),
            vmem_limit_bytes=vmem_limit,
        ),
        cost_estimate=cost,
    )(x, x, x)


def _reference(x):
    # Pure-JAX reference matching the PyTorch semantics exactly.
    if x.shape[1] == 3:
        coeffs = jnp.array([65.738, 129.057, 25.064], jnp.float32) / 256.0
        gray = (x.astype(jnp.float32) * coeffs[None, :, None, None]).sum(
            axis=1, keepdims=True)
    else:
        gray = x.astype(jnp.float32)
    gp = jnp.pad(gray, ((0, 0), (0, 0), (1, 1), (1, 1)))
    x_v = gp[:, :, 2:, 1:-1] - gp[:, :, :-2, 1:-1]
    x_h = gp[:, :, 1:-1, 2:] - gp[:, :, 1:-1, :-2]
    return jnp.sqrt(x_v ** 2 + x_h ** 2 + 1e-6).astype(x.dtype)


if __name__ == "__main__":
    key = jax.random.PRNGKey(0)
    k1, k2 = jax.random.split(key)

    # 3-channel path (gray conversion fused in-kernel), H % row_tile == 0.
    x_rgb = jax.random.normal(k1, (2, 3, 16, 16), dtype=jnp.float32)
    out_rgb = jax.block_until_ready(grad_layer(x_rgb))
    ref_rgb = _reference(x_rgb)
    assert out_rgb.shape == (2, 1, 16, 16), out_rgb.shape
    assert jnp.allclose(out_rgb, ref_rgb, atol=1e-5, rtol=1e-5), \
        float(jnp.max(jnp.abs(out_rgb - ref_rgb)))

    # Single-channel path with non-divisible H (partial last tile + clamped halos)
    # and non-aligned W (masked lane stores + guard columns).
    x_1c = jax.random.normal(k2, (1, 1, 20, 24), dtype=jnp.float32)
    out_1c = jax.block_until_ready(grad_layer(x_1c))
    ref_1c = _reference(x_1c)
    assert out_1c.shape == (1, 1, 20, 24), out_1c.shape
    assert jnp.allclose(out_1c, ref_1c, atol=1e-5, rtol=1e-5), \
        float(jnp.max(jnp.abs(out_1c - ref_1c)))

    print("KERNEL_OK")
</pallas_src>

<mosaic_0001>
module attributes {stable_mosaic.version = 11 : i64} {
  func.func @_grad_kernel(%arg0: i32, %arg1: i32, %arg2: memref<1x3x8x16xf32, #tpu.memory_space<vmem>>, %arg3: memref<1x3x16x16xf32, #tpu.memory_space<vmem>>, %arg4: memref<1x3x8x16xf32, #tpu.memory_space<vmem>>, %arg5: memref<1x1x16x16xf32, #tpu.memory_space<vmem>>, %arg6: memref<32x128xf32, #tpu.memory_space<vmem>>) attributes {dimension_semantics = [#tpu.dimension_semantics<parallel>, #tpu.dimension_semantics<parallel>], iteration_bounds = array<i64: 2, 1>, scalar_prefetch = 0 : i64, scratch_operands = 1 : i64, tpu.core_type = #tpu.core_type<tc>, window_params = [{transform_indices = @transform_0, window_bounds = array<i64: 1, 3, 8, 16>}, {transform_indices = @transform_1, window_bounds = array<i64: 1, 3, 16, 16>}, {transform_indices = @transform_2, window_bounds = array<i64: 1, 3, 8, 16>}, {transform_indices = @transform_3, window_bounds = array<i64: 1, 1, 16, 16>}]} {
    %c16_i32 = arith.constant 16 : i32
    %0 = arith.muli %arg1, %c16_i32 : i32
    %cst = arith.constant 0.000000e+00 : f32
    %1 = vector.broadcast %cst : f32 to vector<32x128xf32>
    %c0 = arith.constant 0 : index
    %c0_0 = arith.constant 0 : index
    %2 = vector.load %arg6[%c0, %c0_0] : memref<32x128xf32, #tpu.memory_space<vmem>>, vector<32x128xf32>
    tpu.vector_store %arg6[%c0, %c0_0], %1 {strides = array<i32>} : memref<32x128xf32, #tpu.memory_space<vmem>>, vector<32x128xf32>,
    %3 = tpu.iota {dimensions = array<i32: 0>} : vector<8x16xi32>
    %4 = tpu.iota {dimensions = array<i32: 0>} : vector<16x16xi32>
    %c8_i32 = arith.constant 8 : i32
    %5 = arith.subi %0, %c8_i32 : i32
    %6 = vector.broadcast %5 : i32 to vector<8x16xi32>
    %7 = arith.addi %6, %3 : vector<8x16xi32>
    %c0_i32 = arith.constant 0 : i32
    %8 = vector.broadcast %c0_i32 : i32 to vector<8x16xi32>
    %9 = arith.cmpi sge, %7, %8 : vector<8x16xi32>
    %c16_i32_1 = arith.constant 16 : i32
    %10 = vector.broadcast %c16_i32_1 : i32 to vector<8x16xi32>
    %11 = arith.cmpi slt, %7, %10 : vector<8x16xi32>
    %12 = arith.andi %9, %11 : vector<8x16xi1>
    %c0_2 = arith.constant 0 : index
    %c0_3 = arith.constant 0 : index
    %c0_4 = arith.constant 0 : index
    %c0_5 = arith.constant 0 : index
    %13 = vector.load %arg2[%c0_2, %c0_3, %c0_4, %c0_5] : memref<1x3x8x16xf32, #tpu.memory_space<vmem>>, vector<1x1x8x16xf32>
    %14 = vector.shape_cast %13 : vector<1x1x8x16xf32> to vector<8x16xf32>
    %cst_6 = arith.constant 0.256789058 : f32
    %15 = vector.broadcast %cst_6 : f32 to vector<8x16xf32>
    %16 = arith.mulf %14, %15 : vector<8x16xf32>
    %c0_7 = arith.constant 0 : index
    %c1 = arith.constant 1 : index
    %c0_8 = arith.constant 0 : index
    %c0_9 = arith.constant 0 : index
    %17 = vector.load %arg2[%c0_7, %c1, %c0_8, %c0_9] : memref<1x3x8x16xf32, #tpu.memory_space<vmem>>, vector<1x1x8x16xf32>
    %18 = vector.shape_cast %17 : vector<1x1x8x16xf32> to vector<8x16xf32>
    %cst_10 = arith.constant 0.504128933 : f32
    %19 = vector.broadcast %cst_10 : f32 to vector<8x16xf32>
    %20 = arith.mulf %18, %19 : vector<8x16xf32>
    %21 = arith.addf %16, %20 : vector<8x16xf32>
    %c0_11 = arith.constant 0 : index
    %c2 = arith.constant 2 : index
    %c0_12 = arith.constant 0 : index
    %c0_13 = arith.constant 0 : index
    %22 = vector.load %arg2[%c0_11, %c2, %c0_12, %c0_13] : memref<1x3x8x16xf32, #tpu.memory_space<vmem>>, vector<1x1x8x16xf32>
    %23 = vector.shape_cast %22 : vector<1x1x8x16xf32> to vector<8x16xf32>
    %cst_14 = arith.constant 0.0979062467 : f32
    %24 = vector.broadcast %cst_14 : f32 to vector<8x16xf32>
    %25 = arith.mulf %23, %24 : vector<8x16xf32>
    %26 = arith.addf %21, %25 : vector<8x16xf32>
    %cst_15 = arith.constant 0.000000e+00 : f32
    %27 = vector.broadcast %cst_15 : f32 to vector<8x16xf32>
    %28 = arith.select %12, %26, %27 : vector<8x16xi1>, vector<8x16xf32>
    %29 = vector.broadcast %0 : i32 to vector<16x16xi32>
    %30 = arith.addi %29, %4 : vector<16x16xi32>
    %c16_i32_16 = arith.constant 16 : i32
    %31 = vector.broadcast %c16_i32_16 : i32 to vector<16x16xi32>
    %32 = arith.cmpi slt, %30, %31 : vector<16x16xi32>
    %c0_17 = arith.constant 0 : index
    %c0_18 = arith.constant 0 : index
    %c0_19 = arith.constant 0 : index
    %c0_20 = arith.constant 0 : index
    %33 = vector.load %arg3[%c0_17, %c0_18, %c0_19, %c0_20] : memref<1x3x16x16xf32, #tpu.memory_space<vmem>>, vector<1x1x16x16xf32>
    %34 = vector.shape_cast %33 : vector<1x1x16x16xf32> to vector<16x16xf32>
    %cst_21 = arith.constant 0.256789058 : f32
    %35 = vector.broadcast %cst_21 : f32 to vector<16x16xf32>
    %36 = arith.mulf %34, %35 : vector<16x16xf32>
    %c0_22 = arith.constant 0 : index
    %c1_23 = arith.constant 1 : index
    %c0_24 = arith.constant 0 : index
    %c0_25 = arith.constant 0 : index
    %37 = vector.load %arg3[%c0_22, %c1_23, %c0_24, %c0_25] : memref<1x3x16x16xf32, #tpu.memory_space<vmem>>, vector<1x1x16x16xf32>
    %38 = vector.shape_cast %37 : vector<1x1x16x16xf32> to vector<16x16xf32>
    %cst_26 = arith.constant 0.504128933 : f32
    %39 = vector.broadcast %cst_26 : f32 to vector<16x16xf32>
    %40 = arith.mulf %38, %39 : vector<16x16xf32>
    %41 = arith.addf %36, %40 : vector<16x16xf32>
    %c0_27 = arith.constant 0 : index
    %c2_28 = arith.constant 2 : index
    %c0_29 = arith.constant 0 : index
    %c0_30 = arith.constant 0 : index
    %42 = vector.load %arg3[%c0_27, %c2_28, %c0_29, %c0_30] : memref<1x3x16x16xf32, #tpu.memory_space<vmem>>, vector<1x1x16x16xf32>
    %43 = vector.shape_cast %42 : vector<1x1x16x16xf32> to vector<16x16xf32>
    %cst_31 = arith.constant 0.0979062467 : f32
    %44 = vector.broadcast %cst_31 : f32 to vector<16x16xf32>
    %45 = arith.mulf %43, %44 : vector<16x16xf32>
    %46 = arith.addf %41, %45 : vector<16x16xf32>
    %cst_32 = arith.constant 0.000000e+00 : f32
    %47 = vector.broadcast %cst_32 : f32 to vector<16x16xf32>
    %48 = arith.select %32, %46, %47 : vector<16x16xi1>, vector<16x16xf32>
    %c16_i32_33 = arith.constant 16 : i32
    %49 = arith.addi %0, %c16_i32_33 : i32
    %50 = vector.broadcast %49 : i32 to vector<8x16xi32>
    %51 = arith.addi %50, %3 : vector<8x16xi32>
    %c16_i32_34 = arith.constant 16 : i32
    %52 = vector.broadcast %c16_i32_34 : i32 to vector<8x16xi32>
    %53 = arith.cmpi slt, %51, %52 : vector<8x16xi32>
    %c0_35 = arith.constant 0 : index
    %c0_36 = arith.constant 0 : index
    %c0_37 = arith.constant 0 : index
    %c0_38 = arith.constant 0 : index
    %54 = vector.load %arg4[%c0_35, %c0_36, %c0_37, %c0_38] : memref<1x3x8x16xf32, #tpu.memory_space<vmem>>, vector<1x1x8x16xf32>
    %55 = vector.shape_cast %54 : vector<1x1x8x16xf32> to vector<8x16xf32>
    %cst_39 = arith.constant 0.256789058 : f32
    %56 = vector.broadcast %cst_39 : f32 to vector<8x16xf32>
    %57 = arith.mulf %55, %56 : vector<8x16xf32>
    %c0_40 = arith.constant 0 : index
    %c1_41 = arith.constant 1 : index
    %c0_42 = arith.constant 0 : index
    %c0_43 = arith.constant 0 : index
    %58 = vector.load %arg4[%c0_40, %c1_41, %c0_42, %c0_43] : memref<1x3x8x16xf32, #tpu.memory_space<vmem>>, vector<1x1x8x16xf32>
    %59 = vector.shape_cast %58 : vector<1x1x8x16xf32> to vector<8x16xf32>
    %cst_44 = arith.constant 0.504128933 : f32
    %60 = vector.broadcast %cst_44 : f32 to vector<8x16xf32>
    %61 = arith.mulf %59, %60 : vector<8x16xf32>
    %62 = arith.addf %57, %61 : vector<8x16xf32>
    %c0_45 = arith.constant 0 : index
    %c2_46 = arith.constant 2 : index
    %c0_47 = arith.constant 0 : index
    %c0_48 = arith.constant 0 : index
    %63 = vector.load %arg4[%c0_45, %c2_46, %c0_47, %c0_48] : memref<1x3x8x16xf32, #tpu.memory_space<vmem>>, vector<1x1x8x16xf32>
    %64 = vector.shape_cast %63 : vector<1x1x8x16xf32> to vector<8x16xf32>
    %cst_49 = arith.constant 0.0979062467 : f32
    %65 = vector.broadcast %cst_49 : f32 to vector<8x16xf32>
    %66 = arith.mulf %64, %65 : vector<8x16xf32>
    %67 = arith.addf %62, %66 : vector<8x16xf32>
    %cst_50 = arith.constant 0.000000e+00 : f32
    %68 = vector.broadcast %cst_50 : f32 to vector<8x16xf32>
    %69 = arith.select %53, %67, %68 : vector<8x16xi1>, vector<8x16xf32>
    %c0_51 = arith.constant 0 : index
    %c0_52 = arith.constant 0 : index
    %70 = vector.load %arg6[%c0_51, %c0_52] : memref<32x128xf32, #tpu.memory_space<vmem>>, vector<8x16xf32>
    tpu.vector_store %arg6[%c0_51, %c0_52], %28 {strides = array<i32>} : memref<32x128xf32, #tpu.memory_space<vmem>>, vector<8x16xf32>,
    %c8 = arith.constant 8 : index
    %c0_53 = arith.constant 0 : index
    %71 = vector.load %arg6[%c8, %c0_53] : memref<32x128xf32, #tpu.memory_space<vmem>>, vector<16x16xf32>
    tpu.vector_store %arg6[%c8, %c0_53], %48 {strides = array<i32>} : memref<32x128xf32, #tpu.memory_space<vmem>>, vector<16x16xf32>,
    %c24 = arith.constant 24 : index
    %c0_54 = arith.constant 0 : index
    %72 = vector.load %arg6[%c24, %c0_54] : memref<32x128xf32, #tpu.memory_space<vmem>>, vector<8x16xf32>
    tpu.vector_store %arg6[%c24, %c0_54], %69 {strides = array<i32>} : memref<32x128xf32, #tpu.memory_space<vmem>>, vector<8x16xf32>,
    %c0_55 = arith.constant 0 : index
    %c0_56 = arith.constant 0 : index
    %73 = vector.load %arg6[%c0_55, %c0_56] : memref<32x128xf32, #tpu.memory_space<vmem>>, vector<32x128xf32>
    %c31_i32 = arith.constant 31 : i32
    %74 = tpu.dynamic_rotate %73 by %c31_i32 dim 0 : vector<32x128xf32>, i32 -> vector<32x128xf32>
    %c1_i32 = arith.constant 1 : i32
    %75 = tpu.dynamic_rotate %73 by %c1_i32 dim 0 : vector<32x128xf32>, i32 -> vector<32x128xf32>
    %76 = arith.subf %74, %75 : vector<32x128xf32>
    %77 = vector.extract_strided_slice %76 {offsets = [8, 0], sizes = [16, 16], strides = [1, 1]} : vector<32x128xf32> to vector<16x16xf32>
    %78 = vector.extract_strided_slice %73 {offsets = [8, 0], sizes = [16, 128], strides = [1, 1]} : vector<32x128xf32> to vector<16x128xf32>
    %c127_i32 = arith.constant 127 : i32
    %79 = tpu.dynamic_rotate %78 by %c127_i32 dim 1 : vector<16x128xf32>, i32 -> vector<16x128xf32>
    %c1_i32_57 = arith.constant 1 : i32
    %80 = tpu.dynamic_rotate %78 by %c1_i32_57 dim 1 : vector<16x128xf32>, i32 -> vector<16x128xf32>
    %81 = arith.subf %79, %80 : vector<16x128xf32>
    %82 = vector.extract_strided_slice %81 {offsets = [0, 0], sizes = [16, 16], strides = [1, 1]} : vector<16x128xf32> to vector<16x16xf32>
    %83 = arith.mulf %77, %77 : vector<16x16xf32>
    %84 = arith.mulf %82, %82 : vector<16x16xf32>
    %85 = arith.addf %83, %84 : vector<16x16xf32>
    %cst_58 = arith.constant 9.99999997E-7 : f32
    %86 = vector.broadcast %cst_58 : f32 to vector<16x16xf32>
    %87 = arith.addf %85, %86 : vector<16x16xf32>
    %88 = math.sqrt %87 : vector<16x16xf32>
    %c0_59 = arith.constant 0 : index
    %c0_60 = arith.constant 0 : index
    %c0_61 = arith.constant 0 : index
    %c0_62 = arith.constant 0 : index
    %89 = vector.load %arg5[%c0_59, %c0_60, %c0_61, %c0_62] : memref<1x1x16x16xf32, #tpu.memory_space<vmem>>, vector<1x1x16x16xf32>
    %90 = vector.shape_cast %89 : vector<1x1x16x16xf32> to vector<16x16xf32>
    %91 = vector.shape_cast %88 : vector<16x16xf32> to vector<1x1x16x16xf32>
    tpu.vector_store %arg5[%c0_59, %c0_60, %c0_61, %c0_62], %91 {strides = array<i32>} : memref<1x1x16x16xf32, #tpu.memory_space<vmem>>, vector<1x1x16x16xf32>,
    return
  }
  func.func @transform_0(%arg0: i32, %arg1: i32) -> (i32, i32, i32, i32) {
    %c2_i32 = arith.constant 2 : i32
    %0 = arith.muli %arg1, %c2_i32 : i32
    %c1_i32 = arith.constant 1 : i32
    %1 = arith.subi %0, %c1_i32 : i32
    %c0_i32 = arith.constant 0 : i32
    %2 = arith.maxsi %1, %c0_i32 : i32
    %c0_i32_0 = arith.constant 0 : i32
    %c0_i32_1 = arith.constant 0 : i32
    %c0_i32_2 = arith.constant 0 : i32
    return %arg0, %c0_i32_0, %2, %c0_i32_1 : i32, i32, i32, i32
  }
  func.func @transform_1(%arg0: i32, %arg1: i32) -> (i32, i32, i32, i32) {
    %c0_i32 = arith.constant 0 : i32
    %c0_i32_0 = arith.constant 0 : i32
    %c0_i32_1 = arith.constant 0 : i32
    return %arg0, %c0_i32, %arg1, %c0_i32_0 : i32, i32, i32, i32
  }
  func.func @transform_2(%arg0: i32, %arg1: i32) -> (i32, i32, i32, i32) {
    %c1_i32 = arith.constant 1 : i32
    %0 = arith.addi %arg1, %c1_i32 : i32
    %c2_i32 = arith.constant 2 : i32
    %1 = arith.muli %0, %c2_i32 : i32
    %c1_i32_0 = arith.constant 1 : i32
    %2 = arith.minsi %1, %c1_i32_0 : i32
    %c0_i32 = arith.constant 0 : i32
    %c0_i32_1 = arith.constant 0 : i32
    %c0_i32_2 = arith.constant 0 : i32
    return %arg0, %c0_i32, %2, %c0_i32_1 : i32, i32, i32, i32
  }
  func.func @transform_3(%arg0: i32, %arg1: i32) -> (i32, i32, i32, i32) {
    %c0_i32 = arith.constant 0 : i32
    %c0_i32_0 = arith.constant 0 : i32
    %c0_i32_1 = arith.constant 0 : i32
    return %arg0, %c0_i32, %arg1, %c0_i32_0 : i32, i32, i32, i32
  }
}

</mosaic_0001>

<bundles_post_ra>
// kernel: tpu_custom_call.1
= control target key start
LH: loop header
LB: loop body
LE: loop exit
PB: predicated region body
PF: predicated region fallthrough
CT: control target
= control target key end

     0   :  { %s1205_s0 = inlined_call_operand.hbm [shape: f32[2,3,16,16], index: 0, kind: input, shape index: {}]   ;;  %s1206_s1 = inlined_call_operand.hbm [shape: f32[2,3,16,16], index: 1, kind: input, shape index: {}]   ;;  %s1207_s2 = inlined_call_operand.hbm [shape: f32[2,3,16,16], index: 2, kind: input, shape index: {}]   ;;  %s1208_s3 = inlined_call_operand.hbm [shape: f32[2,1,16,16], index: 3, kind: output, shape index: {}]  }
   0x1   :  { %1215 = sst [smem:[#allocation16_spill]] %s1205_s0 }
   0x2   :  { %1216 = sst [smem:[#allocation17_spill]] %s1206_s1 }
   0x3   :  { %8 = vsyncpa [#allocation4], 0 }
   0x4   :  { %10 = vsyncpa [#allocation4 + $0x1], 0 }
   0x5   :  { %11 = vsyncpa [#allocation7], 0 }
   0x6   :  { %13 = vsyncpa [#allocation7 + $0x1], 0 }
   0x7   :  { %14 = vsyncpa [#allocation5], 0 }
   0x8   :  { %16 = vsyncpa [#allocation5 + $0x1], 0  ;;  %s923_s12 = smov 0   ;;  %s925_s13 = smov 0  }
   0x9   :  { %s927_s14 = smov 0   ;;  %s929_s15 = smov 0  }
   0xa   :  { %s931_s16 = smov 0   ;;  %s933_s17 = smov 0  }
   0xb LB: > { %1217 = sst [smem:[#allocation13_spill]] %s885_s16  ;;  %s954_s18 = sadd.s32 4294967295, %s889_s17   ;;  %s889_s17 = sphi %s933_s17, %s22_s17   ;;  %s885_s16 = sphi %s931_s16, %s1239_s16   ;;  %s881_s15 = sphi %s929_s15, %s1238_s15   ;;  %s877_s14 = sphi %s927_s14, %s1242_s14   ;;  %s873_s13 = sphi %s925_s13, %s1241_s13   ;;  %s869_s12 = sphi %s923_s12, %s1240_s12  }
   0xc   : > { %s597_s19 = sadd.s32 4294967294, %s889_s17   ;;  %s34_s20 = sadd.s32 1, %s885_s16 }
   0xd   : > { %s51_s21 = sadd.s32 1, %s877_s14  ;;  %p36_p0 = scmp.ge.s32.totalorder %s34_s20, 2 }
   0xe   : > { %p58_p1 = scmp.ne.s32.totalorder %s877_s14, %s873_s13  ;;  %p59_p2 = scmp.eq.s32.totalorder %s889_s17, 0 }
   0xf   : > { %p64_p3 = scmp.ne.s32.totalorder %s873_s13, %s869_s12  ;;  %s1244_s20 = smov (%p36_p0, %s34_s20), 0 }
  0x10   : > { %1218 = sst [smem:[#allocation14_spill]] %s1244_s20  ;;  %p966_p4 = por %p59_p2, %p58_p1 }
  0x11   : > { %p65_p5 = scmp.eq.s32.totalorder %s954_s18, 0  ;;  %s46_s23 = ssub.s32 %s885_s16, %s1244_s20 }
  0x12   : > { %p154_p6 = scmp.eq.s32.totalorder %s954_s18, 1  ;;  %p49_p7 = scmp.eq.s32.totalorder %s46_s23, 0 }
  0x13   : > { %p974_p8 = por %p65_p5, %p64_p3  ;;  %p160_p10 = scmp.eq.s32.totalorder %s597_s19, 1 }
  0x14   : > { %p978_p9 = por %p154_p6, %p58_p1  ;;  %p650_p13 = scmp.lt.s32.totalorder %s889_s17, 2 }
  0x15   : > { %s1220_s24 = scalar_select %p974_p8, 1, 0 }
  0x16   : > { %s1221_s25 = scalar_select %p978_p9, 1, 0 }
  0x17   : > { %s983_s26 = scalar_select %p49_p7, %s877_s14, %s51_s21  }
  0x18   : > { %p985_p11 = por %p160_p10, %p64_p3  ;;  %s992_s28 = sand.u32 1, %s877_s14  }
  0x19   : > { %1222 = sst [smem:[#allocation15_spill]] %s983_s26  ;;  %s996_s30 = smul.u32 768, %s885_s16 }
  0x1a   : > { %s1223_s27 = scalar_select %p985_p11, 1, 0 }
  0x1b   : > { %p1000_p0 = pnand %p650_p13, %p966_p4  ;;  %s206_s5 = sand.u32 1, %s889_s17  }
  0x1c   : > { %s623_s6 = smul.u32 48, %s992_s28  ;;  %s1225_s1 = sld [smem:[#allocation17_spill]] }
  0x1d   : > { %p603_p1 = scmp.ge.s32.totalorder %s889_s17, 1  ;;  %p253_p2 = scmp.lt.s32.totalorder %s889_s17, 3 }
  0x1e   : > { %s210_s10 = scalar_lea.vmem [#allocation6], %s623_s6  ;;  %s1020_s21 = scalar_lea.sflag [#allocation7], %s206_s5 }
  0x1f   : > { %s219_s11 = sshll.u32 %s210_s10, 4  ;;  %p1016_p3 = pnand %p603_p1, %p253_p2  ;;  %s1014_s11 = int_to_ptr.vmem [resolvable:$true] %s219_s11 }
  0x20   : > { %p1026_p5 = pneg %p1000_p0 }
  0x21   : > { %s1226_s19 = scalar_select %p1016_p3, 1, 0 }
  0x22   : > { %s1010_s9 = scalar_lea.hbm %s1225_s1, %s996_s30  ;;  %s718_s8 = scalar_lea.hbm %s1225_s1, 1536 }
  0x23   : > { %s713_s22 = scalar_lea.hbm %s1010_s9, 768  ;;  %p719_p10 = scmp.lt.u32.totalorder %s1010_s9, %s1225_s1 }
  0x24   : > { %p714_p4 = scmp.ne.s32.totalorder %s1010_s9, %s713_s22  ;;  %p720_p13 = scmp.lt.u32.totalorder %s718_s8, %s713_s22 }
  0x25   : > { %p722_p2 = scmp.lt.u32.totalorder %s713_s22, %s1010_s9 }
  0x26   : > { %p716_p6 = pnand %p1026_p5, %p714_p4  ;;  %p721_p1 = por %p720_p13, %p719_p10 }
  0x28   : > { %p717_p7 = pneg %p716_p6  ;;  %p723_p12 = por %p722_p2, %p721_p1 }
  0x2a   : > { %p724_p11 = pnand %p723_p12, %p717_p7 }
  0x2c   : > { %727 = shalt.err (!%p724_p11)
}
  0x2d   : > { %s728_s5 = scalar_lea.vmem %s1014_s11, 768  ;;  %s891_s6 = smov [#allocation6]  }
  0x2e   : > { %p729_p4 = scmp.ne.s32.totalorder %s1014_s11, %s728_s5  ;;  %s733_s7 = sshll.u32 %s891_s6, 4  ;;  %s734_s7 = int_to_ptr.vmem [resolvable:$false] %s733_s7 }
  0x2f   : > { %s735_s29 = scalar_lea.vmem %s734_s7, 1536  ;;  %p736_p8 = scmp.lt.s32.totalorder %s1014_s11, %s734_s7 }
  0x30   : > { %p731_p6 = pnand %p729_p4, %p1026_p5  ;;  %p737_p3 = scmp.lt.s32.totalorder %s735_s29, %s728_s5 }
  0x32   : > { %p732_p9 = pneg %p731_p6  ;;  %p738_p10 = por %p737_p3, %p736_p8 }
  0x34   : > { %p739_p13 = pnand %p738_p10, %p732_p9 }
  0x36   : > { %742 = shalt.err (!%p739_p13)
}
  0x37   : > { %s1213_s22 = smov 128   ;;  %s893_s8 = smov 8  }
  0x38   : > { %642 = dma.hbm_to_vmem [thread:$0]  (!%p1000_p0), %s1010_s9, 768, %s1014_s11, %s1020_s21, %s1213_s22, %s1213_s22, %s893_s8  }
  0x39   : > { %s1228_s0 = sld [smem:[#allocation16_spill]]  ;;  %s1229_s7 = smul.u32 24, %s992_s28 }
  0x3a   : > { %s181_s20 = scalar_lea.sflag [#allocation4], %s992_s28 }
  0x3b   : > { %s184_s29 = scalar_lea.vmem [#allocation3], %s1229_s7 }
  0x3c   : > { %s196_s1 = sshll.u32 %s184_s29, 4  ;;  %s1061_s1 = int_to_ptr.vmem [resolvable:$true] %s196_s1 }
  0x3f   : > { %s1057_s6 = scalar_lea.hbm %s1228_s0, %s996_s30  ;;  %s748_s10 = scalar_lea.hbm %s1228_s0, 1536 }
  0x40   : > { %s743_s16 = scalar_lea.hbm %s1057_s6, 384  ;;  %p749_p12 = scmp.lt.u32.totalorder %s1057_s6, %s1228_s0 }
  0x41   : > { %p744_p8 = scmp.ne.s32.totalorder %s1057_s6, %s743_s16  ;;  %p750_p3 = scmp.lt.u32.totalorder %s748_s10, %s743_s16 }
  0x42   : > { %p752_p1 = scmp.lt.u32.totalorder %s743_s16, %s1057_s6 }
  0x43   : > { %p746_p9 = pnand %p744_p8, %p1026_p5  ;;  %p751_p7 = por %p750_p3, %p749_p12 }
  0x45   : > { %p747_p11 = pneg %p746_p9  ;;  %p753_p2 = por %p752_p1, %p751_p7 }
  0x47   : > { %p754_p4 = pnand %p753_p2, %p747_p11 }
  0x49   : > { %757 = shalt.err (!%p754_p4)
}
  0x4a   : > { %s758_s7 = scalar_lea.vmem %s1061_s1, 384  ;;  %s894_s29 = smov [#allocation3]  }
  0x4b   : > { %p759_p6 = scmp.ne.s32.totalorder %s1061_s1, %s758_s7  ;;  %s763_s9 = sshll.u32 %s894_s29, 4  ;;  %s764_s9 = int_to_ptr.vmem [resolvable:$false] %s763_s9 }
  0x4c   : > { %s765_s22 = scalar_lea.vmem %s764_s9, 768  ;;  %p766_p8 = scmp.lt.s32.totalorder %s1061_s1, %s764_s9 }
  0x4d   : > { %p761_p10 = pnand %p759_p6, %p1026_p5  ;;  %p767_p9 = scmp.lt.s32.totalorder %s765_s22, %s758_s7 }
  0x4f   : > { %p762_p13 = pneg %p761_p10  ;;  %p768_p12 = por %p767_p9, %p766_p8 }
  0x51   : > { %p769_p3 = pnand %p768_p12, %p762_p13 }
  0x53   : > { %772 = shalt.err (!%p769_p3)
}
  0x54   : > { %s895_s16 = smov 256   ;;  %s1230_s11 = smov 128  }
  0x55   : > { %639 = dma.hbm_to_vmem [thread:$0]  (!%p1000_p0), %s1057_s6, 384, %s1061_s1, %s181_s20, %s895_s16, %s1230_s11, %s893_s8  }
  0x56   : > { %s619_s10 = sadd.s32 128, %s996_s30  ;;  %s1231_s5 = smul.u32 24, %s992_s28 }
  0x57   : > { %s1096_s0 = scalar_lea.hbm %s1207_s2, %s619_s10  ;;  %s778_s28 = scalar_lea.hbm %s1207_s2, 1536 }
  0x58   : > { %s233_s7 = scalar_lea.vmem [#allocation8], %s1231_s5  ;;  %s773_s26 = scalar_lea.hbm %s1096_s0, 384 }
  0x59   : > { %s245_s29 = sshll.u32 %s233_s7, 4  ;;  %p774_p11 = scmp.ne.s32.totalorder %s1096_s0, %s773_s26  ;;  %s1098_s29 = int_to_ptr.vmem [resolvable:$true] %s245_s29 }
  0x5a   : > { %p779_p2 = scmp.lt.u32.totalorder %s1096_s0, %s1207_s2  ;;  %p780_p4 = scmp.lt.u32.totalorder %s778_s28, %s773_s26 }
  0x5b   : > { %p776_p7 = pnand %p774_p11, %p1026_p5  ;;  %p782_p10 = scmp.lt.u32.totalorder %s773_s26, %s1096_s0 }
  0x5c   : > { %p781_p6 = por %p780_p4, %p779_p2 }
  0x5d   : > { %p777_p1 = pneg %p776_p7 }
  0x5e   : > { %p783_p13 = por %p782_p10, %p781_p6 }
  0x60   : > { %p784_p8 = pnand %p783_p13, %p777_p1 }
  0x62   : > { %787 = shalt.err (!%p784_p8)
}
  0x63   : > { %s788_s10 = scalar_lea.vmem %s1098_s29, 384  ;;  %s896_s5 = smov [#allocation8]  }
  0x64   : > { %p789_p9 = scmp.ne.s32.totalorder %s1098_s29, %s788_s10  ;;  %s793_s7 = sshll.u32 %s896_s5, 4  ;;  %s794_s7 = int_to_ptr.vmem [resolvable:$false] %s793_s7 }
  0x65   : > { %s795_s9 = scalar_lea.vmem %s794_s7, 768  ;;  %p796_p11 = scmp.lt.s32.totalorder %s1098_s29, %s794_s7 }
  0x66   : > { %p791_p12 = pnand %p789_p9, %p1026_p5  ;;  %p797_p7 = scmp.lt.s32.totalorder %s795_s9, %s788_s10 }
  0x68   : > { %p792_p3 = pneg %p791_p12  ;;  %p798_p2 = por %p797_p7, %p796_p11 }
  0x6a   : > { %p799_p4 = pnand %p798_p2, %p792_p3 }
  0x6c   : > { %802 = shalt.err (!%p799_p4)
}
  0x6d   : > { %645 = dma.hbm_to_vmem [thread:$0]  (!%p1000_p0), %s1096_s0, 384, %s1098_s29, %s1020_s21, %s895_s16, %s1230_s11, %s893_s8  }
  0x6e   : > { %p1232_p5 = scmp.ne.s32.totalorder %s1226_s19, 0 }
  0x6f   : > { %s1128_s26 = sand.u32 (!%p1232_p5), 1, %s873_s13   ;;  %p1233_p1 = scmp.ne.s32.totalorder (!%p1232_p5), %s1220_s24, 0 }
  0x70   : > { %257 = sbr.rel (%p1232_p5) target bundleno = 297 (0x129), region = 32  ;;  %s260_s23 = scalar_lea.sflag (!%p1232_p5), [#allocation4], %s1128_s26 }
  0x77   : > { %856 = dma.done.wait (%p1233_p1), %s260_s23, 384  }
  0x78   : > { %858 = vsyncadd (%p1233_p1), %s260_s23, 4294966912  ;;  %s268_s4 = sand.u32 1, %s954_s18   ;;  %s627_s22 = smul.u32 48, %s1128_s26 }
  0x79   : > { %s269_s0 = scalar_lea.sflag [#allocation7], %s268_s4 }
  0x7a   : > { %s272_s21 = scalar_lea.vmem [#allocation6], %s627_s22 }
  0x7b   : > { %860 = dma.done.wait (%p1233_p1), %s269_s0, 1152  }
  0x7c   : > { %862 = vsyncadd (%p1233_p1), %s269_s0, 4294966144  ;;  %v897_v0 = vmov 0.0   ;;  %vm389_vm0 = vcmask 130048   ;;  %v354_v1 = vld [vmem:[%s272_s21] sm:$0xff]  ;;  %v607_v2 = vld [vmem:[%s272_s21 + $0x10] sm:$0xff]  ;;  %v329_v16 = vlaneseq  ;;  %s898_s18 = smov 1  }
  0x7d   : > { %326 = vst [vmem:[#allocation2 + $0x8] sm:$0xff] %v897_v0  ;;  %325 = vst [vmem:[#allocation2] sm:$0xff] %v897_v0  ;;  %v609_v3 = vld [vmem:[%s272_s21 + $0x20] sm:$0xff]  ;;  %v356_v4 = vmul.f32 0.25678906, %v354_v1  ;;  %v355_v7 = vld [vmem:[%s272_s21 + $0x8] sm:$0xff] }
  0x7e   : > { %327 = vst [vmem:[#allocation2 + $0x10] sm:$0xff] %v897_v0  ;;  %328 = vst [vmem:[#allocation2 + $0x18] sm:$0xff] %v897_v0  ;;  %v361_v5 = vmul.f32 0.50412893, %v607_v2  ;;  %v368_v6 = vmul.f32 0.09790625, %v609_v3 }
  0x7f   : > { %390 = vst.msk [vmem:[#allocation2] sm:$0xff] %vm389_vm0, %v897_v0  ;;  %393 = vst.msk [vmem:[#allocation2 + $0x18] sm:$0xff] %vm389_vm0, %v897_v0  ;;  %v608_v8 = vld [vmem:[%s272_s21 + $0x18] sm:$0xff]  ;;  %v610_v9 = vld [vmem:[%s272_s21 + $0x28] sm:$0xff]  ;;  %v357_v11 = vmul.f32 0.25678906, %v355_v7 }
  0x80   : > { %v363_v10 = vadd.f32 %v361_v5, %v356_v4  ;;  %v362_v12 = vmul.f32 0.50412893, %v608_v8  ;;  %v369_v13 = vmul.f32 0.09790625, %v610_v9  ;;  %v330_v18 = vshrl.u32 %v329_v16, 7  ;;  %s899_s24 = smov 127  }
  0x81   : > { %s604_s19 = sshll.u32 %s1128_s26, 4  ;;  %s620_s8 = sshll.u32 %s881_s15, 8 }
  0x82   : > { %v370_v14 = vadd.f32 %v368_v6, %v363_v10  ;;  %v364_v15 = vadd.f32 %v362_v12, %v357_v11  ;;  %vm407_vm1 = vcmp.lt.s32.totalorder %v330_v18, 1  ;;  %vm401_vm2 = vcmp.lt.s32.totalorder %v330_v18, 7  ;;  %s313_s16 = scalar_lea.vmem [#allocation9], %s604_s19  ;;  %s1153_s20 = scalar_lea.hbm %s1208_s3, %s620_s8 }
  0x83   : > { %s462_s11 = sshll.u32 %s313_s16, 4  ;;  %s447_s15 = scalar_lea.sflag [#allocation5], %s1128_s26  ;;  %s1155_s11 = int_to_ptr.vmem [resolvable:$true] %s462_s11 }
  0x84   : > { %391 = vst.msk [vmem:[#allocation2 + $0x8] sm:$0xff] %vm389_vm0, %v370_v14  ;;  %v371_v17 = vadd.f32 %v369_v13, %v364_v15  ;;  %s803_s28 = scalar_lea.vmem %s1155_s11, 256  ;;  %p1234_p6 = scmp.ne.s32.totalorder %s1221_s25, 0 }
  0x85   : > { %p804_p0 = scmp.ne.s32.totalorder %s1155_s11, %s803_s28  ;;  %s900_s30 = smov [#allocation9]  }
  0x86   : > { %392 = vst.msk [vmem:[#allocation2 + $0x10] sm:$0xff] %vm389_vm0, %v371_v17  ;;  %v394_v19 = vld [vmem:[#allocation2] sm:$0xff]  ;;  %v397_v20 = vld [vmem:[#allocation2 + $0x18] sm:$0xff]  ;;  %s807_s6 = sshll.u32 %s900_s30, 4  ;;  %s808_s6 = int_to_ptr.vmem [resolvable:$false] %s807_s6 }
  0x87   : > { %v404_v21 = vrot.slane %v394_v19, 7  ;;  %v400_v25 = vrot.slane %v397_v20, 1  ;;  %p805_p10 = pnand %p804_p0, %p1234_p6  ;;  %s809_s10 = scalar_lea.vmem %s808_s6, 512 }
  0x88   : > { %p810_p8 = scmp.lt.s32.totalorder %s1155_s11, %s808_s6  ;;  %p811_p9 = scmp.lt.s32.totalorder %s809_s10, %s803_s28 }
  0x89   : > { %p806_p13 = pneg %p805_p10 }
  0x8a   : > { %p812_p12 = por %p811_p9, %p810_p8 }
  0x8b   : > { %v395_v22 = vld [vmem:[#allocation2 + $0x8] sm:$0xff] }
  0x8c   : > { %416 = vrot.lane.b32.xlu1 %v395_v22, %s898_s18  ;;  %v398_v23 = vrot.slane %v395_v22, 1  ;;  %v405_v24 = vrot.slane %v395_v22, 7  ;;  %412 = vrot.lane.b32.xlu0 %v395_v22, %s899_s24  ;;  %p813_p3 = pnand %p812_p12, %p806_p13 }
  0x8d   : > { %v396_v26 = vld [vmem:[#allocation2 + $0x10] sm:$0xff] }
  0x8e   : > { %v399_v27 = vrot.slane %v396_v26, 1  ;;  %v406_v28 = vrot.slane %v396_v26, 7  ;;  %v409_v29 = vsel %vm407_vm1, %v404_v21, %v405_v24 }
  0x90   : > { %418 = vrot.lane.b32.xlu1 %v396_v26, %s898_s18  ;;  %414 = vrot.lane.b32.xlu0 %v396_v26, %s899_s24  ;;  %v403_v30 = vsel %vm401_vm2, %v398_v23, %v399_v27  ;;  %v402_v31 = vsel %vm401_vm2, %v399_v27, %v400_v25  ;;  %v408_v32 = vsel %vm407_vm1, %v405_v24, %v406_v28 }
  0x91   : > { %v410_v33 = vsub.f32 %v403_v30, %v409_v29  ;;  %v411_v34 = vsub.f32 %v402_v31, %v408_v32 }
  0x93   : > { %v422_v38 = vmul.f32 %v410_v33, %v410_v33  ;;  %v423_v44 = vmul.f32 %v411_v34, %v411_v34 }
  0xfe   : > { %v417_v35 = vpop.permute.xlu1 %416  ;;  %v413_v36 = vpop.permute.xlu0 %412 }
  0xff   : > { %v420_v37 = vsub.f32 %v413_v36, %v417_v35 }
 0x101   : > { %v424_v39 = vmul.f32 %v420_v37, %v420_v37 }
 0x102   : > { %v419_v40 = vpop.permute.xlu1 %418  ;;  %v415_v41 = vpop.permute.xlu0 %414 }
 0x103   : > { %v426_v42 = vadd.f32 %v424_v39, %v422_v38  ;;  %v421_v43 = vsub.f32 %v415_v41, %v419_v40 }
 0x105   : > { %v428_v45 = vadd.f32 1e-06, %v426_v42  ;;  %v425_v46 = vmul.f32 %v421_v43, %v421_v43 }
 0x107   : > { %709 = vrsqrt.f32 %v428_v45  ;;  %v427_v47 = vadd.f32 %v425_v46, %v423_v44  ;;  %vm432_vm3 = vcmp.eq.f32.partialorder %v428_v45, inf  ;;  %v435_v51 = vand.u32 2147483648, %v428_v45 }
 0x108   : > { %vm434_vm4 = vcmp.eq.f32.partialorder %v428_v45, 0.0 }
 0x109   : > { %v429_v48 = vadd.f32 1e-06, %v427_v47 }
 0x10b   : > { %711 = vrsqrt.f32 %v429_v48  ;;  %vm439_vm5 = vcmp.eq.f32.partialorder %v429_v48, inf  ;;  %v442_v56 = vand.u32 2147483648, %v429_v48  ;;  %vm441_vm6 = vcmp.eq.f32.partialorder %v429_v48, 0.0 }
 0x111   : > { %v710_v49 = vpop.eup %709 }
 0x112   : > { %v431_v50 = vmul.f32 %v710_v49, %v428_v45 }
 0x114   : > { %v433_v52 = vsel %vm432_vm3, %v428_v45, %v431_v50 }
 0x115   : > { %v436_v53 = vsel %vm434_vm4, %v435_v51, %v433_v52  ;;  %v712_v54 = vpop.eup %711 }
 0x116   : > { %444 = vst.msk [vmem:[%s313_s16] sm:$0xff] %vm389_vm0, %v436_v53  ;;  %v438_v55 = vmul.f32 %v712_v54, %v429_v48 }
 0x118   : > { %v440_v57 = vsel %vm439_vm5, %v429_v48, %v438_v55 }
 0x119   : > { %v443_v58 = vsel %vm441_vm6, %v442_v56, %v440_v57 }
 0x11a   : > { %445 = vst.msk [vmem:[%s313_s16 + $0x8] sm:$0xff] %vm389_vm0, %v443_v58 }
 0x11b   : > { %816 = shalt.err (!%p813_p3)
}
 0x11c   : > { %s817_s5 = scalar_lea.hbm %s1153_s20, 256  ;;  %s821_s23 = scalar_lea.hbm %s1208_s3, 512 }
 0x11d   : > { %p818_p11 = scmp.ne.s32.totalorder %s1153_s20, %s817_s5  ;;  %p822_p4 = scmp.lt.u32.totalorder %s1153_s20, %s1208_s3 }
 0x11e   : > { %p823_p5 = scmp.lt.u32.totalorder %s821_s23, %s817_s5  ;;  %p825_p0 = scmp.lt.u32.totalorder %s817_s5, %s1153_s20 }
 0x11f   : > { %p819_p7 = pnand %p818_p11, %p1234_p6 }
 0x120   : > { %p824_p1 = por %p823_p5, %p822_p4 }
 0x121   : > { %p820_p2 = pneg %p819_p7 }
 0x122   : > { %p826_p10 = por %p825_p0, %p824_p1 }
 0x124   : > { %p827_p13 = pnand %p826_p10, %p820_p2 }
 0x126   : > { %830 = shalt.err (!%p827_p13)
}
 0x127   : > { %s901_s0 = smov 128   ;;  %s902_s21 = smov 8  }
 0x128   : > { %634 = dma.vmem_to_hbm [thread:$0]  (%p1234_p6), %s1155_s11, 256, %s1153_s20, %s447_s15, %s901_s0, %s901_s0, %s902_s21  }
 0x129 PF: > { %s477_s18 = sand.u32 1, %s869_s12   ;;  %p1235_p8 = scmp.ne.s32.totalorder %s1223_s27, 0 }
 0x12a   : > { %p1236_p9 = scmp.ge.s32.totalorder %s889_s17, 2  ;;  %s478_s24 = scalar_lea.sflag [#allocation5], %s477_s18 }
 0x12c   : > { %p647_p12 = pnand %p1236_p9, %p1235_p8 }
 0x12e   : > { %864 = dma.done.wait (!%p647_p12), %s478_s24, 256  }
 0x12f   : > { %866 = vsyncadd (!%p647_p12), %s478_s24, 4294967040  ;;  %s22_s17 = sadd.s32 1, %s889_s17   ;;  %s1237_s19 = sld [smem:[#allocation15_spill]] }
 0x130   : > { %p19_p3 = scmp.ge.s32.totalorder %s22_s17, 4   ;;  %s1238_s15 = sld [smem:[#allocation13_spill]] }
 0x131   : > { %s1239_s16 = sld [smem:[#allocation14_spill]]  ;;  %s1240_s12 = smov %s873_s13 }
 0x132   : > { %s1241_s13 = smov %s877_s14  ;;  %21 = sbr.rel (!%p19_p3) target bundleno = 11 (0xb), region = 107 }
 0x135   : > { %s1242_s14 = smov %s1237_s19 }
 0x139   :  { %483 = vsyncpa [#allocation4], 1 }
 0x13a   :  { %485 = vsyncpa [#allocation4 + $0x1], 1 }
 0x13b   :  { %486 = vsyncpa [#allocation7], 1 }
 0x13c   :  { %488 = vsyncpa [#allocation7 + $0x1], 1 }
 0x13d   :  { %489 = vsyncpa [#allocation5], 1 }
 0x13e   :  { %491 = vsyncpa [#allocation5 + $0x1], 1 }

</bundles_post_ra>
